<compile_context>
chip_gen: v7x
topology: tpu7x:2x2x1
jax: 0.10.0
libtpu: 0.0.40
codegen_flags: <defaults>
</compile_context>

<pallas_src>
import jax
import jax.numpy as jnp
from jax.experimental import pallas as pl
from jax.experimental.pallas import tpu as pltpu


def _fusion_kernel(xp_ref, xc_ref, w1_ref, w2_ref, b_ref, o_ref):
    # xp_ref, xc_ref : (C, tile_p)     channel-major pixel tiles (pixels on lanes)
    # w1_ref, w2_ref : (Cout, C)       split 1x1-conv weights (resident)
    # b_ref          : (Cout, 1)       bias (broadcast over lanes)
    # o_ref          : (Cout, tile_p)  lane-dense output tile
    acc = jnp.dot(w1_ref[...], xp_ref[...], preferred_element_type=jnp.float32)
    acc = acc + jnp.dot(w2_ref[...], xc_ref[...],
                        preferred_element_type=jnp.float32)
    o_ref[...] = (acc + b_ref[...]).astype(o_ref.dtype)


def _round_up(x, m):
    return ((x + m - 1) // m) * m


def _choose_pixel_tile(p, c, itemsize, max_bytes_per_buffer=2 << 20,
                       max_tile=8192):
    """Largest lane-dense (multiple of 128) pixel tile within a VMEM budget."""
    p_padded = _round_up(p, 128)
    cap = max(128, ((max_bytes_per_buffer // max(c * itemsize, 1)) // 128) * 128)
    return min(p_padded, cap, max_tile)


def past_frame_propagation(past_feat, curr_feat, weight, bias, *, tile_p=None):
    """1x1-conv fusion of past/current features (NCHW in, NCHW out).

    Args:
      past_feat, curr_feat: [N, C, H, W]
      weight: [C, 2C, 1, 1]   (nn.Conv2d(channels*2, channels, 1).weight layout)
      bias:   [C]
    Returns:
      [N, C, H, W]
    """
    n, c, h, w = past_feat.shape
    cout = weight.shape[0]
    assert weight.shape == (cout, 2 * c, 1, 1)

    p = h * w
    # Flatten spatial dims only; channels stay on the sublane axis, pixels on
    # the lane axis.  No transposes.
    xp = past_feat.reshape(n, c, p)
    xc = curr_feat.reshape(n, c, p)

    # Split the conv weight into past / curr halves: out = W1 @ past + W2 @ curr.
    w2d = weight.reshape(cout, 2 * c)
    w1 = w2d[:, :c]              # [Cout, C]  acts on past channels
    w2 = w2d[:, c:]              # [Cout, C]  acts on curr channels
    b = bias.reshape(cout, 1)

    itemsize = jnp.dtype(past_feat.dtype).itemsize
    if tile_p is None:
        tile_p = _choose_pixel_tile(p, c, itemsize)
    tile_p = _round_up(min(tile_p, _round_up(p, 128)), 128)

    grid = (n, pl.cdiv(p, tile_p))   # tail tile handled by Pallas OOB masking

    out_flat = pl.pallas_call(
        _fusion_kernel,
        out_shape=jax.ShapeDtypeStruct((n, cout, p), past_feat.dtype),
        grid_spec=pltpu.PrefetchScalarGridSpec(
            num_scalar_prefetch=0,
            grid=grid,
            in_specs=[
                pl.BlockSpec((None, c, tile_p), lambda ni, pi: (ni, 0, pi)),
                pl.BlockSpec((None, c, tile_p), lambda ni, pi: (ni, 0, pi)),
                pl.BlockSpec((cout, c), lambda ni, pi: (0, 0)),   # W1 resident
                pl.BlockSpec((cout, c), lambda ni, pi: (0, 0)),   # W2 resident
                pl.BlockSpec((cout, 1), lambda ni, pi: (0, 0)),   # bias resident
            ],
            out_specs=pl.BlockSpec((None, cout, tile_p),
                                   lambda ni, pi: (ni, 0, pi)),
        ),
        compiler_params=pltpu.CompilerParams(
            dimension_semantics=("parallel", "parallel")),
    )(xp, xc, w1, w2, b)

    return out_flat.reshape(n, cout, h, w)


def _reference(past_feat, curr_feat, weight, bias):
    # Pure-JAX reference: concat on channel dim + 1x1 conv (einsum), NCHW.
    x = jnp.concatenate([past_feat, curr_feat], axis=1)       # [N, 2C, H, W]
    w2d = weight.reshape(weight.shape[0], weight.shape[1])    # [Cout, 2C]
    out = jnp.einsum("nchw,oc->nohw", x, w2d)
    return out + bias.reshape(1, -1, 1, 1)


if __name__ == "__main__":
    key = jax.random.PRNGKey(0)
    k_past, k_curr, k_w, k_b = jax.random.split(key, 4)

    N, C, H, W = 2, 4, 16, 16
    past_feat = jax.random.normal(k_past, (N, C, H, W), dtype=jnp.float32)
    curr_feat = jax.random.normal(k_curr, (N, C, H, W), dtype=jnp.float32)

    # Deterministic "init" of nn.Conv2d(2C, C, kernel_size=1) parameters.
    fan_in = 2 * C
    bound = 1.0 / (fan_in ** 0.5)
    weight = jax.random.uniform(k_w, (C, 2 * C, 1, 1), jnp.float32,
                                minval=-bound, maxval=bound)
    bias = jax.random.uniform(k_b, (C,), jnp.float32,
                              minval=-bound, maxval=bound)

    out = past_frame_propagation(past_feat, curr_feat, weight, bias)
    out = jax.block_until_ready(out)

    ref = _reference(past_feat, curr_feat, weight, bias)
    assert out.shape == (N, C, H, W)
    assert jnp.allclose(out, ref, atol=1e-5, rtol=1e-5)

    print("KERNEL_OK")
</pallas_src>

<mosaic_0001>
module attributes {stable_mosaic.version = 11 : i64} {
  func.func @_fusion_kernel(%arg0: i32, %arg1: i32, %arg2: memref<1x4x256xf32, #tpu.memory_space<vmem>>, %arg3: memref<1x4x256xf32, #tpu.memory_space<vmem>>, %arg4: memref<4x4xf32, #tpu.memory_space<vmem>>, %arg5: memref<4x4xf32, #tpu.memory_space<vmem>>, %arg6: memref<4x1xf32, #tpu.memory_space<vmem>>, %arg7: memref<1x4x256xf32, #tpu.memory_space<vmem>>) attributes {dimension_semantics = [#tpu.dimension_semantics<parallel>, #tpu.dimension_semantics<parallel>], iteration_bounds = array<i64: 2, 1>, scalar_prefetch = 0 : i64, scratch_operands = 0 : i64, tpu.core_type = #tpu.core_type<tc>, window_params = [{transform_indices = @transform_0, window_bounds = array<i64: 1, 4, 256>}, {transform_indices = @transform_1, window_bounds = array<i64: 1, 4, 256>}, {pipeline_mode = #tpu.pipeline_mode<synchronous>, transform_indices = @transform_2, window_bounds = array<i64: 4, 4>}, {pipeline_mode = #tpu.pipeline_mode<synchronous>, transform_indices = @transform_3, window_bounds = array<i64: 4, 4>}, {pipeline_mode = #tpu.pipeline_mode<synchronous>, transform_indices = @transform_4, window_bounds = array<i64: 4, 1>}, {transform_indices = @transform_5, window_bounds = array<i64: 1, 4, 256>}]} {
    %c0 = arith.constant 0 : index
    %c0_0 = arith.constant 0 : index
    %0 = vector.load %arg4[%c0, %c0_0] : memref<4x4xf32, #tpu.memory_space<vmem>>, vector<4x4xf32>
    %c0_1 = arith.constant 0 : index
    %c0_2 = arith.constant 0 : index
    %c0_3 = arith.constant 0 : index
    %1 = vector.load %arg2[%c0_1, %c0_2, %c0_3] : memref<1x4x256xf32, #tpu.memory_space<vmem>>, vector<1x4x256xf32>
    %2 = vector.shape_cast %1 : vector<1x4x256xf32> to vector<4x256xf32>
    %cst = arith.constant dense<0.000000e+00> : vector<4x256xf32>
    %3 = tpu.matmul %0, %2, %cst {dimension_numbers = #tpu.dot_dimension_numbers<[1], [0], [0], [1], [0, 0, 1, 1], [], []>} : vector<4x4xf32>, vector<4x256xf32>, vector<4x256xf32> -> vector<4x256xf32>
    %c0_4 = arith.constant 0 : index
    %c0_5 = arith.constant 0 : index
    %4 = vector.load %arg5[%c0_4, %c0_5] : memref<4x4xf32, #tpu.memory_space<vmem>>, vector<4x4xf32>
    %c0_6 = arith.constant 0 : index
    %c0_7 = arith.constant 0 : index
    %c0_8 = arith.constant 0 : index
    %5 = vector.load %arg3[%c0_6, %c0_7, %c0_8] : memref<1x4x256xf32, #tpu.memory_space<vmem>>, vector<1x4x256xf32>
    %6 = vector.shape_cast %5 : vector<1x4x256xf32> to vector<4x256xf32>
    %cst_9 = arith.constant dense<0.000000e+00> : vector<4x256xf32>
    %7 = tpu.matmul %4, %6, %cst_9 {dimension_numbers = #tpu.dot_dimension_numbers<[1], [0], [0], [1], [0, 0, 1, 1], [], []>} : vector<4x4xf32>, vector<4x256xf32>, vector<4x256xf32> -> vector<4x256xf32>
    %8 = arith.addf %3, %7 : vector<4x256xf32>
    %c0_10 = arith.constant 0 : index
    %c0_11 = arith.constant 0 : index
    %9 = vector.load %arg6[%c0_10, %c0_11] : memref<4x1xf32, #tpu.memory_space<vmem>>, vector<4x1xf32>
    %10 = vector.broadcast %9 : vector<4x1xf32> to vector<4x256xf32>
    %11 = arith.addf %8, %10 : vector<4x256xf32>
    %c0_12 = arith.constant 0 : index
    %c0_13 = arith.constant 0 : index
    %c0_14 = arith.constant 0 : index
    %12 = vector.load %arg7[%c0_12, %c0_13, %c0_14] : memref<1x4x256xf32, #tpu.memory_space<vmem>>, vector<1x4x256xf32>
    %13 = vector.shape_cast %12 : vector<1x4x256xf32> to vector<4x256xf32>
    %14 = vector.shape_cast %11 : vector<4x256xf32> to vector<1x4x256xf32>
    tpu.vector_store %arg7[%c0_12, %c0_13, %c0_14], %14 {strides = array<i32>} : memref<1x4x256xf32, #tpu.memory_space<vmem>>, vector<1x4x256xf32>,
    return
  }
  func.func @transform_0(%arg0: i32, %arg1: i32) -> (i32, i32, i32) {
    %c0_i32 = arith.constant 0 : i32
    %c0_i32_0 = arith.constant 0 : i32
    return %arg0, %c0_i32, %arg1 : i32, i32, i32
  }
  func.func @transform_1(%arg0: i32, %arg1: i32) -> (i32, i32, i32) {
    %c0_i32 = arith.constant 0 : i32
    %c0_i32_0 = arith.constant 0 : i32
    return %arg0, %c0_i32, %arg1 : i32, i32, i32
  }
  func.func @transform_2(%arg0: i32, %arg1: i32) -> (i32, i32) {
    %c0_i32 = arith.constant 0 : i32
    %c0_i32_0 = arith.constant 0 : i32
    %c0_i32_1 = arith.constant 0 : i32
    return %c0_i32, %c0_i32_0 : i32, i32
  }
  func.func @transform_3(%arg0: i32, %arg1: i32) -> (i32, i32) {
    %c0_i32 = arith.constant 0 : i32
    %c0_i32_0 = arith.constant 0 : i32
    %c0_i32_1 = arith.constant 0 : i32
    return %c0_i32, %c0_i32_0 : i32, i32
  }
  func.func @transform_4(%arg0: i32, %arg1: i32) -> (i32, i32) {
    %c0_i32 = arith.constant 0 : i32
    %c0_i32_0 = arith.constant 0 : i32
    %c0_i32_1 = arith.constant 0 : i32
    return %c0_i32, %c0_i32_0 : i32, i32
  }
  func.func @transform_5(%arg0: i32, %arg1: i32) -> (i32, i32, i32) {
    %c0_i32 = arith.constant 0 : i32
    %c0_i32_0 = arith.constant 0 : i32
    return %arg0, %c0_i32, %arg1 : i32, i32, i32
  }
}

</mosaic_0001>

<bundles_post_ra>
// kernel: tpu_custom_call.1
= control target key start
LH: loop header
LB: loop body
LE: loop exit
PB: predicated region body
PF: predicated region fallthrough
CT: control target
= control target key end

     0   :  { %10 = vsyncpa [#allocation3], 0  ;;  %s1129_s0 = inlined_call_operand.hbm [shape: f32[2,4,256], index: 0, kind: input, shape index: {}]   ;;  %s1130_s1 = inlined_call_operand.hbm [shape: f32[2,4,256], index: 1, kind: input, shape index: {}]   ;;  %s1131_s2 = inlined_call_operand.vmem [shape: f32[4,4], index: 2, kind: input, shape index: {}]   ;;  %s1132_s3 = inlined_call_operand.vmem [shape: f32[4,4], index: 3, kind: input, shape index: {}]   ;;  %s1133_s4 = inlined_call_operand.vmem [shape: f32[4,1], index: 4, kind: input, shape index: {}]   ;;  %s1134_s5 = inlined_call_operand.hbm [shape: f32[2,4,256], index: 5, kind: output, shape index: {}]  }
   0x1   :  { %12 = vsyncpa [#allocation3 + $0x1], 0 }
   0x2   :  { %13 = vsyncpa [#allocation6], 0 }
   0x3   :  { %15 = vsyncpa [#allocation6 + $0x1], 0 }
   0x4   :  { %16 = vsyncpa [#allocation4], 0 }
   0x5   :  { %18 = vsyncpa [#allocation4 + $0x1], 0  ;;  %s895_s18 = smov 0   ;;  %s897_s19 = smov 0  }
   0x6   :  { %s899_s20 = smov 0   ;;  %s901_s21 = smov 0  }
   0x7   :  { %s903_s22 = smov 0   ;;  %s905_s23 = smov 0  }
   0x8 LB: > { %s610_s24 = sadd.s32 4294967295, %s858_s23   ;;  %s611_s25 = sadd.s32 4294967294, %s858_s23   ;;  %s858_s23 = sphi %s905_s23, %s24_s23   ;;  %s854_s22 = sphi %s903_s22, %s1154_s22   ;;  %s850_s21 = sphi %s901_s21, %s1153_s21   ;;  %s846_s20 = sphi %s899_s20, %s1152_s20   ;;  %s842_s19 = sphi %s897_s19, %s1151_s19   ;;  %s838_s18 = sphi %s895_s18, %s1150_s18  }
   0x9   : > { %s36_s26 = sadd.s32 1, %s854_s22  ;;  %s45_s27 = sadd.s32 1, %s846_s20 }
   0xa   : > { %p38_p0 = scmp.ge.s32.totalorder %s36_s26, 2  ;;  %p52_p1 = scmp.ne.s32.totalorder %s846_s20, %s842_s19 }
   0xb   : > { %p53_p2 = scmp.eq.s32.totalorder %s858_s23, 0  ;;  %p58_p3 = scmp.ne.s32.totalorder %s842_s19, %s838_s18 }
   0xc   : > { %s1156_s26 = smov (%p38_p0, %s36_s26), 0  ;;  %p59_p5 = scmp.eq.s32.totalorder %s610_s24, 0 }
   0xd   : > { %p936_p4 = por %p53_p2, %p52_p1  ;;  %s40_s29 = ssub.s32 %s854_s22, %s1156_s26 }
   0xe   : > { %p175_p6 = scmp.eq.s32.totalorder %s610_s24, 1  ;;  %p43_p7 = scmp.eq.s32.totalorder %s40_s29, 0 }
   0xf   : > { %p942_p8 = por %p59_p5, %p58_p3  ;;  %p181_p10 = scmp.eq.s32.totalorder %s611_s25, 1 }
  0x10   : > { %p946_p9 = por %p175_p6, %p52_p1  ;;  %p657_p13 = scmp.lt.s32.totalorder %s858_s23, 2 }
  0x11   : > { %s1138_s30 = scalar_select %p942_p8, 1, 0 }
  0x12   : > { %s1139_s6 = scalar_select %p946_p9, 1, 0 }
  0x13   : > { %s951_s7 = scalar_select %p43_p7, %s846_s20, %s45_s27  }
  0x14   : > { %p953_p11 = por %p181_p10, %p58_p3  ;;  %s960_s9 = sand.u32 1, %s846_s20  }
  0x15   : > { %s614_s10 = sshll.u32 %s960_s9, 3  ;;  %s635_s11 = sshll.u32 %s854_s22, 7 }
  0x16   : > { %s1140_s8 = scalar_select %p953_p11, 1, 0 }
  0x17   : > { %s969_s14 = scalar_lea.hbm %s1129_s0, %s635_s11  ;;  %s214_s15 = scalar_lea.vmem [#allocation2], %s614_s10 }
  0x18   : > { %s224_s16 = sshll.u32 %s214_s15, 4  ;;  %p977_p0 = pnand %p657_p13, %p936_p4  ;;  %s973_s16 = int_to_ptr.vmem [resolvable:$true] %s224_s16 }
  0x19   : > { %s211_s24 = scalar_lea.sflag [#allocation3], %s960_s9  ;;  %s712_s25 = scalar_lea.hbm %s969_s14, 128 }
  0x1a   : > { %p713_p3 = scmp.ne.s32.totalorder %s969_s14, %s712_s25  ;;  %p714_p5 = pneg %p977_p0 }
  0x1b   : > { %s717_s28 = scalar_lea.hbm %s1129_s0, 256  ;;  %p718_p4 = scmp.lt.u32.totalorder %s969_s14, %s1129_s0 }
  0x1c   : > { %p715_p6 = pnand %p714_p5, %p713_p3  ;;  %p719_p10 = scmp.lt.u32.totalorder %s717_s28, %s712_s25 }
  0x1d   : > { %p721_p12 = scmp.lt.u32.totalorder %s712_s25, %s969_s14 }
  0x1e   : > { %p716_p7 = pneg %p715_p6  ;;  %p720_p13 = por %p719_p10, %p718_p4 }
  0x20   : > { %p722_p1 = por %p721_p12, %p720_p13 }
  0x22   : > { %p723_p2 = pnand %p722_p1, %p716_p7 }
  0x24   : > { %726 = shalt.err (!%p723_p2)
}
  0x25   : > { %s727_s15 = scalar_lea.vmem %s973_s16, 128  ;;  %s860_s27 = smov [#allocation2]  }
  0x26   : > { %p728_p3 = scmp.ne.s32.totalorder %s973_s16, %s727_s15  ;;  %s732_s29 = sshll.u32 %s860_s27, 4  ;;  %s733_s29 = int_to_ptr.vmem [resolvable:$false] %s732_s29 }
  0x27   : > { %s734_s12 = scalar_lea.vmem %s733_s29, 256  ;;  %p735_p9 = scmp.lt.s32.totalorder %s973_s16, %s733_s29 }
  0x28   : > { %p730_p6 = pnand %p728_p3, %p714_p5  ;;  %p736_p4 = scmp.lt.s32.totalorder %s734_s12, %s727_s15 }
  0x2a   : > { %p731_p11 = pneg %p730_p6  ;;  %p737_p10 = por %p736_p4, %p735_p9 }
  0x2c   : > { %p738_p12 = pnand %p737_p10, %p731_p11 }
  0x2e   : > { %741 = shalt.err (!%p738_p12)
}
  0x2f   : > { %649 = dma.hbm_to_vmem [thread:$0]  (!%p977_p0), %s969_s14, 128, %s973_s16, %s211_s24  }
  0x30   : > { %p1142_p1 = scmp.lt.s32.totalorder %s858_s23, 3  ;;  %p1143_p2 = scmp.ge.s32.totalorder %s858_s23, 1 }
  0x31   : > { %s1022_s15 = scalar_lea.hbm %s1130_s1, %s635_s11  ;;  %s235_s27 = scalar_lea.vmem [#allocation5], %s614_s10 }
  0x32   : > { %p1013_p7 = pnand %p1143_p2, %p1142_p1  ;;  %s245_s29 = sshll.u32 %s235_s27, 4  ;;  %s246_s29 = int_to_ptr.vmem [resolvable:$true] %s245_s29 }
  0x33   : > { %s232_s14 = scalar_lea.sflag [#allocation6], %s960_s9  ;;  %s742_s16 = scalar_lea.hbm %s1022_s15, 128 }
  0x34   : > { %s1144_s25 = scalar_select %p1013_p7, 1, 0 }
  0x35   : > { %p743_p9 = scmp.ne.s32.totalorder %s1022_s15, %s742_s16  ;;  %s747_s11 = scalar_lea.hbm %s1130_s1, 256 }
  0x36   : > { %p748_p3 = scmp.lt.u32.totalorder %s1022_s15, %s1130_s1  ;;  %p749_p6 = scmp.lt.u32.totalorder %s747_s11, %s742_s16 }
  0x37   : > { %p745_p11 = pnand %p743_p9, %p714_p5  ;;  %p751_p10 = scmp.lt.u32.totalorder %s742_s16, %s1022_s15 }
  0x38   : > { %p750_p4 = por %p749_p6, %p748_p3 }
  0x39   : > { %p746_p13 = pneg %p745_p11 }
  0x3a   : > { %p752_p12 = por %p751_p10, %p750_p4 }
  0x3c   : > { %p753_p1 = pnand %p752_p12, %p746_p13 }
  0x3e   : > { %756 = shalt.err (!%p753_p1)
}
  0x3f   : > { %s757_s9 = scalar_lea.vmem %s246_s29, 128  ;;  %s861_s10 = smov [#allocation5]  }
  0x40   : > { %p758_p2 = scmp.ne.s32.totalorder %s246_s29, %s757_s9  ;;  %s762_s27 = sshll.u32 %s861_s10, 4  ;;  %s763_s27 = int_to_ptr.vmem [resolvable:$false] %s762_s27 }
  0x41   : > { %s764_s24 = scalar_lea.vmem %s763_s27, 256  ;;  %p765_p8 = scmp.lt.s32.totalorder %s246_s29, %s763_s27 }
  0x42   : > { %p760_p9 = pnand %p758_p2, %p714_p5  ;;  %p766_p7 = scmp.lt.s32.totalorder %s764_s24, %s757_s9 }
  0x44   : > { %p761_p11 = pneg %p760_p9  ;;  %p767_p3 = por %p766_p7, %p765_p8 }
  0x46   : > { %p768_p6 = pnand %p767_p3, %p761_p11 }
  0x48   : > { %771 = shalt.err (!%p768_p6)
}
  0x49   : > { %652 = dma.hbm_to_vmem [thread:$0]  (!%p977_p0), %s1022_s15, 128, %s246_s29, %s232_s14  }
  0x4a   : > { %p1145_p13 = scmp.ne.s32.totalorder %s1144_s25, 0 }
  0x4b   : > { %s1049_s16 = sand.u32 (!%p1145_p13), 1, %s842_s19   ;;  %p1146_p8 = scmp.ne.s32.totalorder (!%p1145_p13), %s1138_s30, 0 }
  0x4c   : > { %254 = sbr.rel (%p1145_p13) target bundleno = 325 (0x145), region = 40  ;;  %s1052_s12 = sshll.u32 (!%p1145_p13), %s1049_s16, 3 }
  0x4d   : > { %s257_s11 = scalar_lea.sflag (!%p1145_p13), [#allocation3], %s1049_s16  ;;  %s260_s28 = scalar_lea.vmem (!%p1145_p13), [#allocation2], %s1052_s12 }
  0x53   : > { %825 = dma.done.wait (%p1146_p8), %s257_s11, 128  }
  0x54   : > { %827 = vsyncadd (%p1146_p8), %s257_s11, 4294967168  ;;  %s266_s17 = scalar_lea.sflag [#allocation6], %s1049_s16  ;;  %s269_s25 = scalar_lea.vmem [#allocation5], %s1052_s12 }
  0x55   : > { %829 = dma.done.wait (%p1146_p8), %s266_s17, 128  }
  0x56   : > { %831 = vsyncadd (%p1146_p8), %s266_s17, 4294967168  ;;  %v862_v0 = vmov 0.0   ;;  %v863_v1 = vmov 0   ;;  %v307_v2 = vld [vmem:[%s269_s25] sm:$0xff]  ;;  %vm314_vm0 = vcmask 1043456   ;;  %v305_v3 = vld [vmem:[%s260_s28] sm:$0xff] }
  0x57   : > { %383 = vmatprep.mubr.f32.mxu1 %v862_v0  ;;  %463 = vmatprep.mubr.f32.mxu0 %v862_v0  ;;  %v309_v4 = vcombine.high %v307_v2, %v307_v2  ;;  %v391_v5 = vcombine.high %v305_v3, %v305_v3  ;;  %v470_v6 = vld [vmem:[%s1133_s4] sm:$0xf]  ;;  %vm310_vm1 = vcmask 31744   ;;  %s637_s10 = sshll.u32 %s850_s21, 7  ;;  %s300_s27 = scalar_lea.vmem [#allocation7], %s1052_s12 }
  0x58   : > { %709 = vset.pattern.permute.xlu0 %v863_v1  ;;  %v306_v7 = vld [vmem:[%s1132_s3] sm:$0xf]  ;;  %s500_s24 = sshll.u32 %s300_s27, 4  ;;  %s1080_s17 = scalar_lea.hbm %s1134_s5, %s637_s10  ;;  %s1082_s24 = int_to_ptr.vmem [resolvable:$true] %s500_s24 }
  0x59   : > { %v304_v8 = vld [vmem:[%s1131_s2] sm:$0xf]  ;;  %473 = vperm.xlu0 %709, %v470_v6   ;;  %624 = vmatprep.subr.msk.mxu1 %vm314_vm0, %v309_v4  ;;  %s484_s25 = scalar_lea.sflag [#allocation4], %s1049_s16  ;;  %s772_s15 = scalar_lea.vmem %s1082_s24, 128 }
  0x5a   : > { %627 = vmatprep.subr.msk.mxu0 %vm314_vm0, %v391_v5  ;;  %625 = vmatpush1.msk.msra.mxu1 %vm314_vm0, %v307_v2  ;;  %p773_p0 = scmp.ne.s32.totalorder %s1082_s24, %s772_s15  ;;  %p1147_p5 = scmp.ne.s32.totalorder %s1139_s6, 0 }
  0x5b   : > { %628 = vmatpush1.msk.msra.mxu0 %vm314_vm0, %v305_v3  ;;  %626 = vmatmul.mubr.msk.f32.vlgmr.msra.gmra.mrb[0].mxu1 %vm310_vm1, %v306_v7  ;;  %s864_s21 = smov [#allocation7]  }
  0x5c   : > { %629 = vmatmul.mubr.msk.f32.vlgmr.msra.gmra.mrb[0].mxu0 %vm310_vm1, %v304_v8  ;;  %p774_p7 = pnand %p773_p0, %p1147_p5  ;;  %s776_s12 = sshll.u32 %s864_s21, 4  ;;  %s777_s12 = int_to_ptr.vmem [resolvable:$false] %s776_s12 }
  0x5d   : > { %s778_s29 = scalar_lea.vmem %s777_s12, 256  ;;  %p779_p10 = scmp.lt.s32.totalorder %s1082_s24, %s777_s12 }
  0x5e   : > { %p775_p4 = pneg %p774_p7  ;;  %p780_p12 = scmp.lt.s32.totalorder %s778_s29, %s772_s15 }
  0x60   : > { %p781_p1 = por %p780_p12, %p779_p10 }
  0x62   : > { %p782_p2 = pnand %p781_p1, %p775_p4 }
  0xd8   : > { %v474_v9 = vpop.permute.xlu0 %473 }
 0x12e   : > { %v385_v10 = vpop.f32.mrb[0].mxu1 }
 0x12f   : > { %v465_v11 = vpop.f32.mrb[0].mxu0  ;;  %v387_v13 = vpop.f32.mrb[1].mxu1 }
 0x130   : > { %v466_v12 = vadd.f32 %v465_v11, %v385_v10  ;;  %v467_v14 = vpop.f32.mrb[1].mxu0 }
 0x131   : > { %v468_v15 = vadd.f32 %v467_v14, %v387_v13 }
 0x132   : > { %v476_v16 = vadd.f32 %v474_v9, %v466_v12 }
 0x133   : > { %v477_v17 = vadd.f32 %v474_v9, %v468_v15 }
 0x135   : > { %v480_v18 = vcombine.low %v476_v16, %v477_v17 }
 0x137   : > { %482 = vst [vmem:[%s300_s27] sm:$0xff] %v480_v18 }
 0x138   : > { %785 = shalt.err (!%p782_p2)
}
 0x139   : > { %s786_s16 = scalar_lea.hbm %s1080_s17, 128  ;;  %s790_s30 = scalar_lea.hbm %s1134_s5, 256 }
 0x13a   : > { %p787_p9 = scmp.ne.s32.totalorder %s1080_s17, %s786_s16  ;;  %p791_p6 = scmp.lt.u32.totalorder %s1080_s17, %s1134_s5 }
 0x13b   : > { %p792_p13 = scmp.lt.u32.totalorder %s790_s30, %s786_s16  ;;  %p794_p0 = scmp.lt.u32.totalorder %s786_s16, %s1080_s17 }
 0x13c   : > { %p788_p11 = pnand %p787_p9, %p1147_p5 }
 0x13d   : > { %p793_p8 = por %p792_p13, %p791_p6 }
 0x13e   : > { %p789_p3 = pneg %p788_p11 }
 0x13f   : > { %p795_p7 = por %p794_p0, %p793_p8 }
 0x141   : > { %p796_p4 = pnand %p795_p7, %p789_p3 }
 0x143   : > { %799 = shalt.err (!%p796_p4)
}
 0x144   : > { %644 = dma.vmem_to_hbm [thread:$0]  (%p1147_p5), %s1082_s24, 128, %s1080_s17, %s484_s25  }
 0x145 PF: > { %s512_s27 = sand.u32 1, %s838_s18   ;;  %p1148_p10 = scmp.ne.s32.totalorder %s1140_s8, 0 }
 0x146   : > { %p1149_p12 = scmp.ge.s32.totalorder %s858_s23, 2  ;;  %s513_s11 = scalar_lea.sflag [#allocation4], %s512_s27 }
 0x148   : > { %p654_p1 = pnand %p1149_p12, %p1148_p10 }
 0x14a   : > { %833 = dma.done.wait (!%p654_p1), %s513_s11, 128  }
 0x14b   : > { %835 = vsyncadd (!%p654_p1), %s513_s11, 4294967168  ;;  %s24_s23 = sadd.s32 1, %s858_s23   ;;  %s1150_s18 = smov %s842_s19 }
 0x14c   : > { %p21_p2 = scmp.ge.s32.totalorder %s24_s23, 4   ;;  %s1151_s19 = smov %s846_s20 }
 0x14d   : > { %s1152_s20 = smov %s951_s7  ;;  %s1153_s21 = smov %s854_s22 }
 0x14e   : > { %s1154_s22 = smov %s1156_s26  ;;  %23 = sbr.rel (!%p21_p2) target bundleno = 8 (0x8), region = 98 }
 0x155   :  { %518 = vsyncpa [#allocation3], 1 }
 0x156   :  { %520 = vsyncpa [#allocation3 + $0x1], 1 }
 0x157   :  { %521 = vsyncpa [#allocation6], 1 }
 0x158   :  { %523 = vsyncpa [#allocation6 + $0x1], 1 }
 0x159   :  { %524 = vsyncpa [#allocation4], 1 }
 0x15a   :  { %526 = vsyncpa [#allocation4 + $0x1], 1 }

</bundles_post_ra>
